<compile_context>
chip_gen: v7x
topology: tpu7x:2x2x1
jax: 0.10.0
libtpu: 0.0.40
codegen_flags: <defaults>
</compile_context>

<pallas_src>
import functools

import jax
import jax.numpy as jnp
from jax import lax
from jax.experimental import pallas as pl
from jax.experimental.pallas import tpu as pltpu


def temporal_block_kernel(x_ref, w1_ref, b1_ref, w2_ref, b2_ref, o_ref,
                          *, L, K, d, Cout):
    """One batch element per grid step, channel-major layout.

    x_ref  : (1, Cin, L)        bf16 input (NCL slice)
    w1_ref : (K*2*Cout, Cin)    bf16: per-tap [W1_k ; (Wd if k==K-1 else 0)]
    b1_ref : (2*Cout, 1)        f32 : [b1 ; bd]
    w2_ref : (K*Cout, Cout)     bf16: per-tap W2_k stacked along rows
    b2_ref : (Cout, 1)          f32
    o_ref  : (1, Cout, L)       f32 output
    """
    x = x_ref[0]                                             # (Cin, L) bf16

    row = lax.broadcasted_iota(jnp.int32, (L, L), 0)
    col = lax.broadcasted_iota(jnp.int32, (L, L), 1)

    def shift_mat(s):
        # S[i, j] = 1 iff j == i + s  =>  (A @ S)[:, t] = A[:, t - s], 0 for t < s
        return jnp.where(col == row + s, 1.0, 0.0).astype(jnp.float32)

    def causal_sum(g, rows):
        # g: (K*rows, L) f32 per-tap products; tap k must be shifted right by
        # s_k = (K-1-k)*d (causal left pad == PyTorch pad + chomp).  Last tap
        # needs no shift, so it seeds the accumulator.
        acc = g[(K - 1) * rows:]
        for k in range(K - 1):
            s = (K - 1 - k) * d
            acc = acc + jnp.dot(g[k * rows:(k + 1) * rows], shift_mat(s),
                                preferred_element_type=jnp.float32)
        return acc

    # ---- conv1 (all K taps in one MXU matmul) + fused residual 1x1 conv ----
    g1 = jnp.dot(w1_ref[...], x, preferred_element_type=jnp.float32)   # (K*2Cout, L)
    z1 = causal_sum(g1, 2 * Cout) + b1_ref[...]                        # (2Cout, L)
    h1 = jnp.maximum(z1[:Cout], 0.0)       # conv1 -> chomp -> relu (dropout1 = id)
    res = z1[Cout:]                        # downsample(x) + bias (no relu)

    # ---- conv2 (h1 stays value-resident; no VMEM scratch round-trip) -------
    g2 = jnp.dot(w2_ref[...], h1.astype(w2_ref.dtype),
                 preferred_element_type=jnp.float32)                   # (K*Cout, L)
    h2 = jnp.maximum(causal_sum(g2, Cout) + b2_ref[...], 0.0)          # dropout2 = id

    # TODO(synk): training-mode dropout (pltpu.prng_* masks) not implemented;
    # this is the inference forward pass.
    o_ref[0] = jnp.maximum(h2 + res, 0.0).astype(o_ref.dtype)


def temporal_block(x_ncl, params, *, kernel_size, dilation):
    """x_ncl: (B, Cin, L) float32 (PyTorch NCL).  Returns (B, Cout, L) float32."""
    B, Cin, L = x_ncl.shape
    K, d = kernel_size, dilation

    W1, b1 = params["w1"], params["b1"]                    # (Cout, Cin, K), (Cout,)
    W2, b2 = params["w2"], params["b2"]                    # (Cout, Cout, K), (Cout,)
    Wd, bd = params["wd"], params["bd"]                    # (Cout, Cin, 1), (Cout,)
    Cout = W1.shape[0]

    # One-off (tiny) weight re-layout on the host side:
    #   conv1 taps and the residual 1x1 conv stacked along output rows so the
    #   kernel does a single weight matmul per conv and reuses x for res.
    w1_taps = jnp.transpose(W1, (2, 0, 1))                               # (K, Cout, Cin)
    res_taps = jnp.zeros((K, Cout, Cin), W1.dtype).at[K - 1].set(Wd[:, :, 0])
    w1_stack = jnp.concatenate([w1_taps, res_taps], axis=1)              # (K, 2Cout, Cin)
    w1_stack = w1_stack.reshape(K * 2 * Cout, Cin).astype(jnp.bfloat16)
    w2_stack = jnp.transpose(W2, (2, 0, 1)).reshape(K * Cout, Cout).astype(jnp.bfloat16)
    b1_aug = jnp.concatenate([b1, bd]).reshape(2 * Cout, 1).astype(jnp.float32)
    b2_col = b2.reshape(Cout, 1).astype(jnp.float32)

    # bf16 activations halve HBM read bytes; accumulation stays f32 in-kernel.
    # (In a full model the activations would already arrive in bf16.)
    x_bf = x_ncl.astype(jnp.bfloat16)

    kernel = functools.partial(temporal_block_kernel, L=L, K=K, d=d, Cout=Cout)

    return pl.pallas_call(
        kernel,
        out_shape=jax.ShapeDtypeStruct((B, Cout, L), jnp.float32),
        grid_spec=pltpu.PrefetchScalarGridSpec(
            num_scalar_prefetch=0,
            grid=(B,),
            in_specs=[
                pl.BlockSpec((1, Cin, L), lambda b: (b, 0, 0)),
                pl.BlockSpec((K * 2 * Cout, Cin), lambda b: (0, 0)),
                pl.BlockSpec((2 * Cout, 1), lambda b: (0, 0)),
                pl.BlockSpec((K * Cout, Cout), lambda b: (0, 0)),
                pl.BlockSpec((Cout, 1), lambda b: (0, 0)),
            ],
            out_specs=pl.BlockSpec((1, Cout, L), lambda b: (b, 0, 0)),
        ),
        compiler_params=pltpu.CompilerParams(
            dimension_semantics=("parallel",),
            vmem_limit_bytes=32 * 1024 * 1024,
        ),
    )(x_bf, w1_stack, b1_aug, w2_stack, b2_col)


def weight_norm_effective(v, g):
    """Effective weight of nn.utils.weight_norm (dim=0): g * v / ||v|| per out-channel."""
    norm = jnp.sqrt(jnp.sum(v * v, axis=(1, 2), keepdims=True))
    return g[:, None, None] * v / norm


def reference_temporal_block(x_ncl, params, *, kernel_size, dilation):
    """Pure-JAX reference: causal left padding == PyTorch symmetric pad + chomp."""
    p = (kernel_size - 1) * dilation
    dn = ("NCH", "OIH", "NCH")

    def causal_conv(x, w, b):
        y = lax.conv_general_dilated(x, w, window_strides=(1,),
                                     padding=[(p, 0)], rhs_dilation=(dilation,),
                                     dimension_numbers=dn)
        return y + b[None, :, None]

    h1 = jax.nn.relu(causal_conv(x_ncl, params["w1"], params["b1"]))
    h2 = jax.nn.relu(causal_conv(h1, params["w2"], params["b2"]))
    res = lax.conv_general_dilated(x_ncl, params["wd"], window_strides=(1,),
                                   padding=[(0, 0)], dimension_numbers=dn)
    res = res + params["bd"][None, :, None]
    return jax.nn.relu(h2 + res)


if __name__ == "__main__":
    # Small, module-consistent shapes: x is (Batch, input_channel, seq_len).
    B, Cin, Cout, L = 2, 4, 8, 16
    K, stride, dilation = 3, 1, 2                          # stride=1 per the module

    key = jax.random.PRNGKey(0)
    ks = jax.random.split(key, 10)

    # Deterministic synthetic parameters (weight_norm reparam: store v and g,
    # effective weight = g * v / ||v||; conv weights ~ N(0, 0.01^2)).
    v1 = 0.01 * jax.random.normal(ks[0], (Cout, Cin, K), jnp.float32)
    g1 = 1.0 + 0.1 * jax.random.normal(ks[1], (Cout,), jnp.float32)
    b1 = 0.05 * jax.random.normal(ks[2], (Cout,), jnp.float32)
    v2 = 0.01 * jax.random.normal(ks[3], (Cout, Cout, K), jnp.float32)
    g2 = 1.0 + 0.1 * jax.random.normal(ks[4], (Cout,), jnp.float32)
    b2 = 0.05 * jax.random.normal(ks[5], (Cout,), jnp.float32)
    wd = 0.01 * jax.random.normal(ks[6], (Cout, Cin, 1), jnp.float32)
    bd = 0.05 * jax.random.normal(ks[7], (Cout,), jnp.float32)

    params = {
        "w1": weight_norm_effective(v1, g1), "b1": b1,
        "w2": weight_norm_effective(v2, g2), "b2": b2,
        "wd": wd, "bd": bd,
    }

    x = jax.random.normal(ks[8], (B, Cin, L), jnp.float32)

    out = jax.block_until_ready(
        temporal_block(x, params, kernel_size=K, dilation=dilation))
    assert out.shape == (B, Cout, L)

    # Reference on bf16-rounded operands (kernel runs bf16 MXU operands with
    # f32 accumulation); biases and everything else stay f32.
    rnd = lambda a: a.astype(jnp.bfloat16).astype(jnp.float32)
    ref_params = dict(params)
    for name in ("w1", "w2", "wd"):
        ref_params[name] = rnd(params[name])
    ref = reference_temporal_block(rnd(x), ref_params,
                                   kernel_size=K, dilation=dilation)

    assert jnp.allclose(out, ref, atol=2e-2, rtol=2e-2), (
        "mismatch vs reference; max abs diff = "
        f"{float(jnp.max(jnp.abs(out - ref)))}")
    print("KERNEL_OK")
</pallas_src>

<mosaic_0001>
module attributes {stable_mosaic.version = 11 : i64} {
  func.func @temporal_block_kernel(%arg0: i32, %arg1: memref<1x4x16xbf16, #tpu.memory_space<vmem>>, %arg2: memref<48x4xbf16, #tpu.memory_space<vmem>>, %arg3: memref<16x1xf32, #tpu.memory_space<vmem>>, %arg4: memref<24x8xbf16, #tpu.memory_space<vmem>>, %arg5: memref<8x1xf32, #tpu.memory_space<vmem>>, %arg6: memref<1x8x16xf32, #tpu.memory_space<vmem>>) attributes {dimension_semantics = [#tpu.dimension_semantics<parallel>], iteration_bounds = array<i64: 2>, scalar_prefetch = 0 : i64, scratch_operands = 0 : i64, tpu.core_type = #tpu.core_type<tc>, window_params = [{transform_indices = @transform_0, window_bounds = array<i64: 1, 4, 16>}, {pipeline_mode = #tpu.pipeline_mode<synchronous>, transform_indices = @transform_1, window_bounds = array<i64: 48, 4>}, {pipeline_mode = #tpu.pipeline_mode<synchronous>, transform_indices = @transform_2, window_bounds = array<i64: 16, 1>}, {pipeline_mode = #tpu.pipeline_mode<synchronous>, transform_indices = @transform_3, window_bounds = array<i64: 24, 8>}, {pipeline_mode = #tpu.pipeline_mode<synchronous>, transform_indices = @transform_4, window_bounds = array<i64: 8, 1>}, {transform_indices = @transform_5, window_bounds = array<i64: 1, 8, 16>}]} {
    %c0 = arith.constant 0 : index
    %c0_0 = arith.constant 0 : index
    %c0_1 = arith.constant 0 : index
    %0 = vector.load %arg1[%c0, %c0_0, %c0_1] : memref<1x4x16xbf16, #tpu.memory_space<vmem>>, vector<1x4x16xbf16>
    %1 = vector.shape_cast %0 : vector<1x4x16xbf16> to vector<4x16xbf16>
    %2 = tpu.iota {dimensions = array<i32: 0>} : vector<16x16xi32>
    %3 = tpu.iota {dimensions = array<i32: 1>} : vector<16x16xi32>
    %c0_2 = arith.constant 0 : index
    %c0_3 = arith.constant 0 : index
    %4 = vector.load %arg2[%c0_2, %c0_3] : memref<48x4xbf16, #tpu.memory_space<vmem>>, vector<48x4xbf16>
    %cst = arith.constant dense<0.000000e+00> : vector<48x16xf32>
    %5 = tpu.matmul %4, %1, %cst {dimension_numbers = #tpu.dot_dimension_numbers<[1], [0], [0], [1], [0, 0, 1, 1], [], []>} : vector<48x4xbf16>, vector<4x16xbf16>, vector<48x16xf32> -> vector<48x16xf32>
    %6 = vector.extract_strided_slice %5 {offsets = [32, 0], sizes = [16, 16], strides = [1, 1]} : vector<48x16xf32> to vector<16x16xf32>
    %7 = vector.extract_strided_slice %5 {offsets = [0, 0], sizes = [16, 16], strides = [1, 1]} : vector<48x16xf32> to vector<16x16xf32>
    %c4_i32 = arith.constant 4 : i32
    %8 = vector.broadcast %c4_i32 : i32 to vector<16x16xi32>
    %9 = arith.addi %2, %8 : vector<16x16xi32>
    %10 = arith.cmpi eq, %3, %9 : vector<16x16xi32>
    %cst_4 = arith.constant 1.000000e+00 : f32
    %cst_5 = arith.constant 0.000000e+00 : f32
    %11 = vector.broadcast %cst_4 : f32 to vector<16x16xf32>
    %12 = vector.broadcast %cst_5 : f32 to vector<16x16xf32>
    %13 = arith.select %10, %11, %12 : vector<16x16xi1>, vector<16x16xf32>
    %cst_6 = arith.constant dense<0.000000e+00> : vector<16x16xf32>
    %14 = tpu.matmul %7, %13, %cst_6 {dimension_numbers = #tpu.dot_dimension_numbers<[1], [0], [0], [1], [0, 0, 1, 1], [], []>} : vector<16x16xf32>, vector<16x16xf32>, vector<16x16xf32> -> vector<16x16xf32>
    %15 = arith.addf %6, %14 : vector<16x16xf32>
    %16 = vector.extract_strided_slice %5 {offsets = [16, 0], sizes = [16, 16], strides = [1, 1]} : vector<48x16xf32> to vector<16x16xf32>
    %c2_i32 = arith.constant 2 : i32
    %17 = vector.broadcast %c2_i32 : i32 to vector<16x16xi32>
    %18 = arith.addi %2, %17 : vector<16x16xi32>
    %19 = arith.cmpi eq, %3, %18 : vector<16x16xi32>
    %cst_7 = arith.constant 1.000000e+00 : f32
    %cst_8 = arith.constant 0.000000e+00 : f32
    %20 = vector.broadcast %cst_7 : f32 to vector<16x16xf32>
    %21 = vector.broadcast %cst_8 : f32 to vector<16x16xf32>
    %22 = arith.select %19, %20, %21 : vector<16x16xi1>, vector<16x16xf32>
    %cst_9 = arith.constant dense<0.000000e+00> : vector<16x16xf32>
    %23 = tpu.matmul %16, %22, %cst_9 {dimension_numbers = #tpu.dot_dimension_numbers<[1], [0], [0], [1], [0, 0, 1, 1], [], []>} : vector<16x16xf32>, vector<16x16xf32>, vector<16x16xf32> -> vector<16x16xf32>
    %24 = arith.addf %15, %23 : vector<16x16xf32>
    %c0_10 = arith.constant 0 : index
    %c0_11 = arith.constant 0 : index
    %25 = vector.load %arg3[%c0_10, %c0_11] : memref<16x1xf32, #tpu.memory_space<vmem>>, vector<16x1xf32>
    %26 = vector.broadcast %25 : vector<16x1xf32> to vector<16x16xf32>
    %27 = arith.addf %24, %26 : vector<16x16xf32>
    %28 = vector.extract_strided_slice %27 {offsets = [0, 0], sizes = [8, 16], strides = [1, 1]} : vector<16x16xf32> to vector<8x16xf32>
    %cst_12 = arith.constant 0.000000e+00 : f32
    %29 = vector.broadcast %cst_12 : f32 to vector<8x16xf32>
    %30 = arith.maximumf %28, %29 : vector<8x16xf32>
    %31 = vector.extract_strided_slice %27 {offsets = [8, 0], sizes = [8, 16], strides = [1, 1]} : vector<16x16xf32> to vector<8x16xf32>
    %c0_13 = arith.constant 0 : index
    %c0_14 = arith.constant 0 : index
    %32 = vector.load %arg4[%c0_13, %c0_14] : memref<24x8xbf16, #tpu.memory_space<vmem>>, vector<24x8xbf16>
    %33 = arith.truncf %30 : vector<8x16xf32> to vector<8x16xbf16>
    %cst_15 = arith.constant dense<0.000000e+00> : vector<24x16xf32>
    %34 = tpu.matmul %32, %33, %cst_15 {dimension_numbers = #tpu.dot_dimension_numbers<[1], [0], [0], [1], [0, 0, 1, 1], [], []>} : vector<24x8xbf16>, vector<8x16xbf16>, vector<24x16xf32> -> vector<24x16xf32>
    %35 = vector.extract_strided_slice %34 {offsets = [16, 0], sizes = [8, 16], strides = [1, 1]} : vector<24x16xf32> to vector<8x16xf32>
    %36 = vector.extract_strided_slice %34 {offsets = [0, 0], sizes = [8, 16], strides = [1, 1]} : vector<24x16xf32> to vector<8x16xf32>
    %c4_i32_16 = arith.constant 4 : i32
    %37 = vector.broadcast %c4_i32_16 : i32 to vector<16x16xi32>
    %38 = arith.addi %2, %37 : vector<16x16xi32>
    %39 = arith.cmpi eq, %3, %38 : vector<16x16xi32>
    %cst_17 = arith.constant 1.000000e+00 : f32
    %cst_18 = arith.constant 0.000000e+00 : f32
    %40 = vector.broadcast %cst_17 : f32 to vector<16x16xf32>
    %41 = vector.broadcast %cst_18 : f32 to vector<16x16xf32>
    %42 = arith.select %39, %40, %41 : vector<16x16xi1>, vector<16x16xf32>
    %cst_19 = arith.constant dense<0.000000e+00> : vector<8x16xf32>
    %43 = tpu.matmul %36, %42, %cst_19 {dimension_numbers = #tpu.dot_dimension_numbers<[1], [0], [0], [1], [0, 0, 1, 1], [], []>} : vector<8x16xf32>, vector<16x16xf32>, vector<8x16xf32> -> vector<8x16xf32>
    %44 = arith.addf %35, %43 : vector<8x16xf32>
    %45 = vector.extract_strided_slice %34 {offsets = [8, 0], sizes = [8, 16], strides = [1, 1]} : vector<24x16xf32> to vector<8x16xf32>
    %c2_i32_20 = arith.constant 2 : i32
    %46 = vector.broadcast %c2_i32_20 : i32 to vector<16x16xi32>
    %47 = arith.addi %2, %46 : vector<16x16xi32>
    %48 = arith.cmpi eq, %3, %47 : vector<16x16xi32>
    %cst_21 = arith.constant 1.000000e+00 : f32
    %cst_22 = arith.constant 0.000000e+00 : f32
    %49 = vector.broadcast %cst_21 : f32 to vector<16x16xf32>
    %50 = vector.broadcast %cst_22 : f32 to vector<16x16xf32>
    %51 = arith.select %48, %49, %50 : vector<16x16xi1>, vector<16x16xf32>
    %cst_23 = arith.constant dense<0.000000e+00> : vector<8x16xf32>
    %52 = tpu.matmul %45, %51, %cst_23 {dimension_numbers = #tpu.dot_dimension_numbers<[1], [0], [0], [1], [0, 0, 1, 1], [], []>} : vector<8x16xf32>, vector<16x16xf32>, vector<8x16xf32> -> vector<8x16xf32>
    %53 = arith.addf %44, %52 : vector<8x16xf32>
    %c0_24 = arith.constant 0 : index
    %c0_25 = arith.constant 0 : index
    %54 = vector.load %arg5[%c0_24, %c0_25] : memref<8x1xf32, #tpu.memory_space<vmem>>, vector<8x1xf32>
    %55 = vector.broadcast %54 : vector<8x1xf32> to vector<8x16xf32>
    %56 = arith.addf %53, %55 : vector<8x16xf32>
    %cst_26 = arith.constant 0.000000e+00 : f32
    %57 = vector.broadcast %cst_26 : f32 to vector<8x16xf32>
    %58 = arith.maximumf %56, %57 : vector<8x16xf32>
    %59 = arith.addf %58, %31 : vector<8x16xf32>
    %cst_27 = arith.constant 0.000000e+00 : f32
    %60 = vector.broadcast %cst_27 : f32 to vector<8x16xf32>
    %61 = arith.maximumf %59, %60 : vector<8x16xf32>
    %c0_28 = arith.constant 0 : index
    %c0_29 = arith.constant 0 : index
    %c0_30 = arith.constant 0 : index
    %62 = vector.load %arg6[%c0_28, %c0_29, %c0_30] : memref<1x8x16xf32, #tpu.memory_space<vmem>>, vector<1x8x16xf32>
    %63 = vector.shape_cast %62 : vector<1x8x16xf32> to vector<8x16xf32>
    %64 = vector.shape_cast %61 : vector<8x16xf32> to vector<1x8x16xf32>
    tpu.vector_store %arg6[%c0_28, %c0_29, %c0_30], %64 {strides = array<i32>} : memref<1x8x16xf32, #tpu.memory_space<vmem>>, vector<1x8x16xf32>,
    return
  }
  func.func @transform_0(%arg0: i32) -> (i32, i32, i32) {
    %c0_i32 = arith.constant 0 : i32
    %c0_i32_0 = arith.constant 0 : i32
    %c0_i32_1 = arith.constant 0 : i32
    return %arg0, %c0_i32, %c0_i32_0 : i32, i32, i32
  }
  func.func @transform_1(%arg0: i32) -> (i32, i32) {
    %c0_i32 = arith.constant 0 : i32
    %c0_i32_0 = arith.constant 0 : i32
    %c0_i32_1 = arith.constant 0 : i32
    return %c0_i32, %c0_i32_0 : i32, i32
  }
  func.func @transform_2(%arg0: i32) -> (i32, i32) {
    %c0_i32 = arith.constant 0 : i32
    %c0_i32_0 = arith.constant 0 : i32
    %c0_i32_1 = arith.constant 0 : i32
    return %c0_i32, %c0_i32_0 : i32, i32
  }
  func.func @transform_3(%arg0: i32) -> (i32, i32) {
    %c0_i32 = arith.constant 0 : i32
    %c0_i32_0 = arith.constant 0 : i32
    %c0_i32_1 = arith.constant 0 : i32
    return %c0_i32, %c0_i32_0 : i32, i32
  }
  func.func @transform_4(%arg0: i32) -> (i32, i32) {
    %c0_i32 = arith.constant 0 : i32
    %c0_i32_0 = arith.constant 0 : i32
    %c0_i32_1 = arith.constant 0 : i32
    return %c0_i32, %c0_i32_0 : i32, i32
  }
  func.func @transform_5(%arg0: i32) -> (i32, i32, i32) {
    %c0_i32 = arith.constant 0 : i32
    %c0_i32_0 = arith.constant 0 : i32
    %c0_i32_1 = arith.constant 0 : i32
    return %arg0, %c0_i32, %c0_i32_0 : i32, i32, i32
  }
}

</mosaic_0001>

<bundles_post_ra>
// kernel: tpu_custom_call.1
= control target key start
LH: loop header
LB: loop body
LE: loop exit
PB: predicated region body
PF: predicated region fallthrough
CT: control target
= control target key end

     0   :  { %10 = vsyncpa [#allocation3], 0  ;;  %s1255_s0 = inlined_call_operand.vmem [shape: bf16[2,4,16], index: 0, kind: input, shape index: {}]   ;;  %s1256_s1 = inlined_call_operand.vmem [shape: bf16[48,4], index: 1, kind: input, shape index: {}]   ;;  %s1257_s2 = inlined_call_operand.vmem [shape: f32[16,1], index: 2, kind: input, shape index: {}]   ;;  %s1258_s3 = inlined_call_operand.vmem [shape: bf16[24,8], index: 3, kind: input, shape index: {}]   ;;  %s1259_s4 = inlined_call_operand.vmem [shape: f32[8,1], index: 4, kind: input, shape index: {}]   ;;  %s1260_s5 = inlined_call_operand.hbm [shape: f32[2,8,16], index: 5, kind: output, shape index: {}]  }
   0x1   :  { %12 = vsyncpa [#allocation3 + $0x1], 0  ;;  %s1085_s18 = smov 0   ;;  %s1087_s19 = smov 0  }
   0x2   :  { %s1089_s20 = smov 0   ;;  %s1091_s21 = smov 0  }
   0x3 LB: > { %s1106_s22 = sadd.s32 4294967295, %s1047_s21   ;;  %s816_s23 = sadd.s32 4294967294, %s1047_s21   ;;  %s1047_s21 = sphi %s1091_s21, %s1270_s21   ;;  %s1043_s20 = sphi %s1089_s20, %s1269_s20   ;;  %s1039_s19 = sphi %s1087_s19, %s1268_s19   ;;  %s1035_s18 = sphi %s1085_s18, %s1267_s18  }
   0x4   : > { %s1110_s24 = sadd.s32 1, %s1047_s21   ;;  %s135_s25 = sadd.s32 1, %s1043_s20 }
   0x5   : > { %s132_s26 = ssub.s32 %s1047_s21, %s1110_s24  ;;  %p145_p0 = scmp.ne.s32.totalorder %s1043_s20, %s1039_s19 }
   0x6   : > { %p133_p1 = scmp.eq.s32.totalorder %s132_s26, 0  ;;  %p146_p2 = scmp.eq.s32.totalorder %s1106_s22, 1 }
   0x7   : > { %p151_p3 = scmp.ne.s32.totalorder %s1039_s19, %s1035_s18  ;;  %p152_p4 = scmp.eq.s32.totalorder %s816_s23, 1 }
   0x8   : > { %s1121_s27 = scalar_select %p133_p1, %s1043_s20, %s135_s25  }
   0x9   : > { %p1123_p5 = por %p146_p2, %p145_p0  ;;  %p1127_p6 = por %p152_p4, %p151_p3 }
   0xa   : > { %p819_p7 = scmp.ge.s32.totalorder %s1047_s21, 1  ;;  %p189_p8 = scmp.lt.s32.totalorder %s1047_s21, 3 }
   0xc   : > { %p190_p9 = pnand %p819_p7, %p189_p8 }
   0xd   : > { %p216_p10 = scmp.lt.s32.totalorder (!%p190_p9), %s1106_s22, 1  ;;  %v222_v0 = vlaneseq (!%p190_p9)  ;;  %v1049_v1 = vmov (!%p190_p9), 0.0   ;;  %vm1050_vm0 = vmmov (!%p190_p9), 0   ;;  %vm258_vm1 = vcmask (!%p190_p9), 1041408   ;;  %v980_v9 = vld [vmem:[%s1256_s1] sm:$0xff] (!%p190_p9)   ;;  %v981_v12 = vld [vmem:[%s1256_s1 + $0x8] sm:$0xff] (!%p190_p9)  }
   0xe   : > { %193 = sbr.rel (%p190_p9) target bundleno = 930 (0x3a2), region = 40  ;;  %871 = vmatprep.subr.bf16.mxu0 (!%p190_p9), %v1049_v1  ;;  %873 = vmatprep.mubr.msk.bf16.mxu0 (!%p190_p9), %vm1050_vm0, %v1049_v1  ;;  %vm248_vm3 = vcmask (!%p190_p9), 31744   ;;  %v1051_v11 = vmov (!%p190_p9), 1.0|1.0   ;;  %v982_v13 = vld [vmem:[%s1256_s1 + $0x10] sm:$0xff] (!%p190_p9)   ;;  %v498_v17 = vld [vmem:[%s1257_s2] sm:$0xff] (!%p190_p9) }
   0xf   : > { %v223_v2 = vshrl.u32 (!%p190_p9), %v222_v0, 7  ;;  %v226_v3 = vand.u32 (!%p190_p9), 127, %v222_v0  ;;  %v499_v18 = vld [vmem:[%s1257_s2 + $0x8] sm:$0xff] (!%p190_p9)  ;;  %v1052_v19 = vmov (!%p190_p9), 0   ;;  %v732_v20 = vld [vmem:[%s1259_s4] sm:$0xff] (!%p190_p9)  ;;  %vm325_vm9 = vcmask (!%p190_p9), 130048  }
  0x10   : > { %978 = vset.pattern.permute.xlu0 (!%p190_p9), %v1052_v19  ;;  %979 = vset.pattern.permute.xlu1 (!%p190_p9), %v1052_v19  ;;  %v983_v33 = vld [vmem:[%s1258_s3] sm:$0xff] (!%p190_p9)   ;;  %vm525_vm10 = vcmask (!%p190_p9), 64512   ;;  %vm532_vm11 = vcmask (!%p190_p9), 1043456   ;;  %v984_v47 = vld [vmem:[%s1258_s3 + $0x8] ss:$0 sps:$4 sm:$0xff] (!%p190_p9)   ;;  %v1053_v48 = vmov (!%p190_p9), 0.0|0.0  }
  0x11   : > { %v224_v4 = vadd.s32 (!%p190_p9), 8, %v223_v2  ;;  %v319_v5 = vadd.s32 (!%p190_p9), 4, %v223_v2  ;;  %v409_v14 = vadd.s32 (!%p190_p9), 2, %v223_v2  ;;  %502 = vperm.xlu0 (!%p190_p9), %978, %v498_v17   ;;  %507 = vperm.xlu1 (!%p190_p9), %979, %v499_v18   ;;  %s213_s10 = sand.u32 (!%p190_p9), 1, %s1039_s19   ;;  %s847_s12 = sshll.u32 (!%p190_p9), %s1106_s22, 7 }
  0x12   : > { %s820_s11 = sshll.u32 (!%p190_p9), %s213_s10, 3  ;;  %s1212_s17 = scalar_lea.hbm (!%p190_p9), %s1260_s5, %s847_s12 }
  0x13   : > { %v320_v7 = vadd.s32 (!%p190_p9), 4, %v224_v4  ;;  %vm321_vm2 = vcmp.eq.s32.totalorder (!%p190_p9), %v226_v3, %v319_v5  ;;  %v410_v15 = vadd.s32 (!%p190_p9), 2, %v224_v4  ;;  %vm411_vm6 = vcmp.eq.s32.totalorder (!%p190_p9), %v226_v3, %v409_v14  ;;  %s215_s13 = scalar_lea.vmem (!%p190_p9), [#allocation2], %s820_s11  ;;  %s744_s23 = scalar_lea.sflag (!%p190_p9), [#allocation3], %s213_s10 }
  0x14   : > { %s757_s14 = sshll.u32 (!%p190_p9), %s215_s13, 4  ;;  %s1214_s14 = int_to_ptr.vmem [resolvable:$true] %s757_s14 }
  0x15   : > { %s217_s30 = scalar_select %p216_p10, %s1106_s22, 1  ;;  %vm322_vm4 = vcmp.eq.s32.totalorder %v226_v3, %v320_v7  ;;  %vm412_vm7 = vcmp.eq.s32.totalorder %v226_v3, %v410_v15  ;;  %735 = vperm.xlu0 %978, %v732_v20  }
  0x16   : > { %vm1144_vm5 = vmpackc.low %vm322_vm4, %vm321_vm2  ;;  %s985_s25 = scalar_lea.vmem %s1214_s14, 128  ;;  %s1054_s22 = smov [#allocation2]  }
  0x17   : > { %s821_s6 = sshll.u32 %s217_s30, 1  ;;  %920 = vmatprep.subr.msk.bf16.mxu1 %vm1144_vm5, %v1051_v11  ;;  %vm1164_vm8 = vmpackc.low %vm412_vm7, %vm411_vm6  ;;  %p986_p11 = scmp.ne.s32.totalorder %s1214_s14, %s985_s25 }
  0x18   : > { %s219_s9 = scalar_lea.vmem %s1255_s0, %s821_s6  ;;  %922 = vmatpush3.bf16.msk.msra.mxu1 %vm1144_vm5, %v1051_v11  ;;  %s989_s26 = sshll.u32 %s1054_s22, 4  ;;  %s990_s26 = int_to_ptr.vmem [resolvable:$false] %s989_s26 }
  0x19   : > { %v221_v6 = vld [vmem:[%s219_s9] sm:$0x3]  ;;  %924 = vmatprep.subr.msk.bf16.mxu1 %vm1164_vm8, %v1051_v11  ;;  %p987_p12 = pnand %p986_p11, %p1123_p5  ;;  %s991_s30 = scalar_lea.vmem %s990_s26, 256 }
  0x1a   : > { %v260_v8 = vsel %vm258_vm1, %v221_v6, 0  ;;  %p992_p0 = scmp.lt.s32.totalorder %s1214_s14, %s990_s26  ;;  %p993_p1 = scmp.lt.s32.totalorder %s991_s30, %s985_s25 }
  0x1b   : > { %872 = vmatpush3.bf16.msra.mxu0 %v260_v8  ;;  %p988_p13 = pneg %p987_p12 }
  0x1c   : > { %p994_p2 = por %p993_p1, %p992_p0 }
  0x1e   : > { %874 = vmatmul.mubr.msk.bf16.vlgmr.msra.gmra.mrb[0].mxu0 %vm248_vm3, %v980_v9  ;;  %p995_p3 = pnand %p994_p2, %p988_p13 }
  0x1f   : > { %877 = vmatprep.mubr.msk.bf16.mxu0 %vm1050_vm0, %v1049_v1 }
  0x26   : > { %878 = vmatmul.mubr.msk.bf16.gmra.mrb[4].mxu0 %vm248_vm3, %v981_v12 }
  0x27   : > { %881 = vmatprep.mubr.msk.bf16.mxu0 %vm1050_vm0, %v1049_v1 }
  0x2e   : > { %882 = vmatmul.mubr.msk.bf16.gmra.mrb[8].mxu0 %vm248_vm3, %v982_v13 }
  0x90   : > { %v503_v42 = vpop.permute.xlu0 %502  ;;  %v508_v59 = vpop.permute.xlu1 %507 }
  0x94   : > { %v736_v60 = vpop.permute.xlu0 %735 }
  0xf1   : > { %v296_v21 = vpop.f32.mrb[0].mxu0 }
  0xf2   : > { %v875_v22 = vpop.f32.mrb[1].mxu0  ;;  %889 = vmatprep.mubr.msk.f32.mxu1 %vm325_vm9, %v296_v21 }
  0xf3   : > { %v299_v23 = vpop.f32.mrb[2].mxu0 }
  0xf4   : > { %v876_v24 = vpop.f32.mrb[3].mxu0  ;;  %890 = vmatmul.mubr.msk.f32.vlgmr.msra.gmra.mrb[0].mxu1 %vm325_vm9, %v299_v23 }
  0xf5   : > { %926 = vmatpush3.bf16.msk.msra.mxu1 %vm1164_vm8, %v1051_v11 }
  0xf9   : > { %v304_v25 = vpop.f32.mrb[4].mxu0 }
  0xfa   : > { %v879_v26 = vpop.f32.mrb[5].mxu0  ;;  %896 = vmatprep.mubr.msk.f32.mxu1 %vm325_vm9, %v304_v25 }
  0xfb   : > { %v307_v27 = vpop.f32.mrb[6].mxu0 }
  0xfc   : > { %v880_v28 = vpop.f32.mrb[7].mxu0  ;;  %897 = vmatmul.mubr.msk.f32.vlgmr.msra.gmra.mrb[2].mxu1 %vm325_vm9, %v307_v27 }
  0xfd   : > { %901 = vmatprep.mubr.msk.bf16.mxu1 %vm525_vm10, %v983_v33 }
 0x101   : > { %v312_v29 = vpop.f32.mrb[8].mxu0 }
 0x102   : > { %v883_v30 = vpop.f32.mrb[9].mxu0 }
 0x103   : > { %v315_v31 = vpop.f32.mrb[10].mxu0 }
 0x104   : > { %v884_v32 = vpop.f32.mrb[11].mxu0 }
 0x1c7   : > { %v891_v34 = vpop.f32.mrb[0].mxu1 }
 0x1c8   : > { %v408_v35 = vadd.f32 %v891_v34, %v315_v31  ;;  %v398_v36 = vpop.f32.mrb[1].mxu1 }
 0x1c9   : > { %v407_v37 = vadd.f32 %v398_v36, %v312_v29 }
 0x1cf   : > { %v898_v38 = vpop.f32.mrb[2].mxu1 }
 0x1d0   : > { %v497_v39 = vadd.f32 %v898_v38, %v408_v35  ;;  %v487_v40 = vpop.f32.mrb[3].mxu1 }
 0x1d1   : > { %v496_v41 = vadd.f32 %v487_v40, %v407_v37 }
 0x1d2   : > { %v511_v62 = vadd.f32 %v508_v59, %v497_v39 }
 0x1d3   : > { %v510_v43 = vadd.f32 %v503_v42, %v496_v41 }
 0x1d5   : > { %v512_v44 = vmax.f32 %v510_v43, 0.0 }
 0x1d7   : > { %v516_v45 = vpack.c.bf16 %v512_v44, %v512_v44 }
 0x1d9   : > { %933 = vmatprep.subr.msk.bf16.mxu1 %vm532_vm11, %v516_v45  ;;  %v534_v46 = vsel %vm532_vm11, %v516_v45, 0 }
 0x1da   : > { %900 = vmatpush3.bf16.msra.mxu1 %v534_v46 }
 0x1db   : > { %927 = vmatprep.subr.bf16.mxu1 %v1053_v48 }
 0x1dd   : > { %902 = vmatmul.mubr.msk.bf16.vlgmr.msra.gmra.mrb[4].mxu1 %vm525_vm10, %v984_v47 }
 0x1de   : > { %929 = vmatpush3.bf16.msk.msra.mxu1 %vm1144_vm5, %v1051_v11  ;;  %909 = vmatprep.mubr.msk.f32.mxu1 %vm1050_vm0, %v1049_v1 }
 0x1df   : > { %930 = vmatprep.subr.bf16.mxu1 %v1053_v48 }
 0x2b0   : > { %v903_v49 = vpop.f32.mrb[4].mxu1 }
 0x2b1   : > { %v570_v50 = vpop.f32.mrb[5].mxu1 }
 0x2b2   : > { %v904_v51 = vpop.f32.mrb[6].mxu1  ;;  %910 = vmatmul.mubr.msk.f32.vlgmr.msra.gmra.mrb[8].mxu1 %vm325_vm9, %v570_v50 }
 0x2b3   : > { %v573_v52 = vpop.f32.mrb[7].mxu1  ;;  %932 = vmatpush3.bf16.msk.msra.mxu1 %vm1164_vm8, %v1051_v11  ;;  %916 = vmatprep.mubr.msk.f32.mxu1 %vm1050_vm0, %v1049_v1 }
 0x2b6   : > { %917 = vmatmul.mubr.msk.f32.vlgmr.msra.gmra.mrb[10].mxu1 %vm325_vm9, %v573_v52 }
 0x385   : > { %v653_v53 = vpop.f32.mrb[8].mxu1 }
 0x386   : > { %v657_v54 = vadd.f32 %v903_v49, %v653_v53  ;;  %v911_v55 = vpop.f32.mrb[9].mxu1 }
 0x389   : > { %v727_v56 = vpop.f32.mrb[10].mxu1 }
 0x38a   : > { %v731_v57 = vadd.f32 %v727_v56, %v657_v54  ;;  %v918_v58 = vpop.f32.mrb[11].mxu1 }
 0x38c   : > { %v738_v61 = vadd.f32 %v736_v60, %v731_v57 }
 0x38e   : > { %v739_v63 = vmax.f32 %v738_v61, 0.0 }
 0x390   : > { %v740_v0 = vadd.f32 %v739_v63, %v511_v62 }
 0x392   : > { %v741_v1 = vmax.f32 %v740_v0, 0.0 }
 0x394   : > { %742 = vst.msk [vmem:[%s215_s13] sm:$0xff] %vm325_vm9, %v741_v1 }
 0x395   : > { %998 = shalt.err (!%p995_p3)
}
 0x396   : > { %s999_s6 = scalar_lea.hbm %s1212_s17, 128  ;;  %s1003_s9 = scalar_lea.hbm %s1260_s5, 256 }
 0x397   : > { %p1000_p4 = scmp.ne.s32.totalorder %s1212_s17, %s999_s6  ;;  %p1004_p9 = scmp.lt.u32.totalorder %s1212_s17, %s1260_s5 }
 0x398   : > { %p1005_p10 = scmp.lt.u32.totalorder %s1003_s9, %s999_s6  ;;  %p1007_p12 = scmp.lt.u32.totalorder %s999_s6, %s1212_s17 }
 0x399   : > { %p1001_p7 = pnand %p1000_p4, %p1123_p5 }
 0x39a   : > { %p1006_p11 = por %p1005_p10, %p1004_p9 }
 0x39b   : > { %p1002_p8 = pneg %p1001_p7 }
 0x39c   : > { %p1008_p13 = por %p1007_p12, %p1006_p11 }
 0x39e   : > { %p1009_p0 = pnand %p1008_p13, %p1002_p8 }
 0x3a0   : > { %1012 = shalt.err (!%p1009_p0)
}
 0x3a1   : > { %934 = dma.vmem_to_hbm [thread:$0]  (%p1123_p5), %s1214_s14, 128, %s1212_s17, %s744_s23  }
 0x3a2 PF: > { %p940_p1 = scmp.ge.s32.totalorder %s1047_s21, 2  ;;  %s769_s12 = sand.u32 1, %s1035_s18  }
 0x3a3   : > { %s770_s13 = scalar_lea.sflag [#allocation3], %s769_s12 }
 0x3a4   : > { %p937_p2 = pnand %p940_p1, %p1127_p6 }
 0x3a6   : > { %1030 = dma.done.wait (!%p937_p2), %s770_s13, 128  }
 0x3a7   : > { %1032 = vsyncadd (!%p937_p2), %s770_s13, 4294967168  ;;  %p15_p3 = scmp.ge.s32.totalorder %s1110_s24, 4   ;;  %s1267_s18 = smov %s1039_s19 }
 0x3a8   : > { %s1268_s19 = smov %s1043_s20  ;;  %s1269_s20 = smov %s1121_s27 }
 0x3a9   : > { %s1270_s21 = smov %s1110_s24  ;;  %17 = sbr.rel (!%p15_p3) target bundleno = 3 (0x3), region = 75 }
 0x3b0   :  { %775 = vsyncpa [#allocation3], 1 }
 0x3b1   :  { %777 = vsyncpa [#allocation3 + $0x1], 1 }

</bundles_post_ra>
